<compile_context>
chip_gen: v7x
topology: tpu7x:2x2x1
jax: 0.10.0
libtpu: 0.0.40
codegen_flags: <defaults>
</compile_context>

<pallas_src>
import math

import jax
import jax.numpy as jnp
from jax import lax
from jax.experimental import pallas as pl
from jax.experimental.pallas import tpu as pltpu

# ----------------------------- config (mirrors cfg['tracking']) ---------------------
POSENET_FREQ = 4                         # cfg['tracking']['poseNet_freq']
ENC = 2 * POSENET_FREQ + 1               # 9 = [t, sin x4, cos x4]
LAYERS_FEAT = [None, 32, 32, 32, 32]     # cfg['tracking']['layers_feat'] (last out -> 4)
SKIP = (2,)                              # cfg['tracking']['skip']
N_IMG = 100                              # cfg['n_img'] -> max_index
MIN_INDEX = 0.0

H = 32                                   # hidden width
OUT = 4                                  # quaternion
KENC = 16                                # padded 16-row in-kernel encoding block
KIN_PAD = 48                             # padded input-feature axis of the packed slab
BCOL = KIN_PAD - 1                       # bias column for layers 1 and 3
FREQ_COL = 44                            # rows 0..7: [pi, 2pi, 4pi, 8pi] x2
PHASE_COL = 45                           # rows 0..7: [0]*4 + [pi/2]*4


def _layer_dims():
    L = list(zip(LAYERS_FEAT[:-1], LAYERS_FEAT[1:]))
    dims = []
    for li, (k_in, k_out) in enumerate(L):
        if li == 0:
            k_in = ENC
        if li in SKIP:
            k_in += ENC
        if li == len(L) - 1:
            k_out = OUT
        dims.append((k_in, k_out))
    return dims


def init_params(key):
    """Deterministic synthetic init mimicking tensorflow_init_weights:
    xavier_uniform for hidden layers, U[0, 1e-6) for the last ('small').
    The module zero-inits biases; small nonzero biases are used here purely so the
    test exercises the (folded) bias path.  Weights stored (in, out): ref does h@W+b."""
    dims = _layer_dims()
    keys = jax.random.split(key, 2 * len(dims))
    params = []
    for li, (k_in, k_out) in enumerate(dims):
        kw, kb = keys[2 * li], keys[2 * li + 1]
        if li == len(dims) - 1:
            w = jax.random.uniform(kw, (k_in, k_out), jnp.float32, 0.0, 1e-6)
        else:
            bound = math.sqrt(6.0 / (k_in + k_out))
            w = jax.random.uniform(kw, (k_in, k_out), jnp.float32, -bound, bound)
        b = jax.random.uniform(kb, (1, k_out), jnp.float32, -0.05, 0.05)
        params.append((w, b))
    return params


def pack_params(params):
    """Pack all weights, biases and the encoding constants into one (4*H, KIN_PAD)
    f32 slab in (out, in) orientation.

    Kernel-side encoding row order ('enc16', 16 rows):
      rows 0..3  sin(2^k*pi*t)   rows 4..7  cos(2^k*pi*t)
      row  8     t               row  9     1 (bias fold)      rows 10..15  0

    Layer li occupies rows [li*H, li*H + k_out):
      layer 0: cols 0..8 = permuted W0^T, col 9 = b0 (vs. the ones row)
      layer 1: cols 0..31 = W1^T,        col BCOL = b1
      layer 2: cols 0..31 = W2_h^T, cols 32..40 = permuted W2_enc^T, col 41 = b2
      layer 3: cols 0..31 = W3^T,        col BCOL = b3
    Constants: col FREQ_COL / PHASE_COL, rows 0..7 (exact 2^k*pi and 0 / pi/2)."""
    dims = _layer_dims()
    nl = len(dims)
    slab = jnp.zeros((nl * H, KIN_PAD), jnp.float32)

    # torch enc order [t, sin*4, cos*4]  ->  kernel order [sin*4, cos*4, t]
    perm = jnp.array(list(range(1, ENC)) + [0], dtype=jnp.int32)

    for li, ((k_in, k_out), (w, b)) in enumerate(zip(dims, params)):
        r0 = li * H
        wt = w.T                                               # (k_out, k_in)
        if li == 0:
            slab = slab.at[r0:r0 + k_out, 0:ENC].set(wt[:, perm])
            slab = slab.at[r0:r0 + k_out, ENC].set(b[0])       # col 9: bias (ones row)
        elif li in SKIP:
            slab = slab.at[r0:r0 + k_out, 0:H].set(wt[:, 0:H])            # h segment
            enc_w = wt[:, H:H + ENC]                                      # enc segment
            slab = slab.at[r0:r0 + k_out, H:H + ENC].set(enc_w[:, perm])
            slab = slab.at[r0:r0 + k_out, H + ENC].set(b[0])   # col 41: bias (ones row)
        else:
            slab = slab.at[r0:r0 + k_out, 0:k_in].set(wt)
            slab = slab.at[r0:r0 + k_out, BCOL].set(b[0])

    freqs = (2.0 ** jnp.arange(POSENET_FREQ, dtype=jnp.float32)) * jnp.pi  # exact 2^k*pi
    slab = slab.at[0:POSENET_FREQ, FREQ_COL].set(freqs)
    slab = slab.at[POSENET_FREQ:2 * POSENET_FREQ, FREQ_COL].set(freqs)
    slab = slab.at[POSENET_FREQ:2 * POSENET_FREQ, PHASE_COL].set(
        jnp.float32(math.pi / 2))
    return slab


# ----------------------------------- kernel -----------------------------------------
def rotsnet_kernel(idx_ref, p_ref, out_ref):
    f32 = jnp.float32
    bf16 = jnp.bfloat16
    tb = idx_ref.shape[1]                                   # lane-block of the batch

    # index normalization: 2*(i - min)/(max - min) - 1        -> (1, tb)
    t = 2.0 * (idx_ref[...] - MIN_INDEX) / (N_IMG - MIN_INDEX) - 1.0

    # positional encoding: exactly one sublane tile of transcendental work.
    # rows 0..3 -> sin(2^k*pi*t); rows 4..7 -> cos(2^k*pi*t) == sin(... + pi/2)
    freq = p_ref[0:8, FREQ_COL:FREQ_COL + 1]                # (8,1) exact 2^k*pi
    phase = p_ref[0:8, PHASE_COL:PHASE_COL + 1]             # (8,1) 0 / pi/2
    sincos = jnp.sin(freq * t + phase)                      # (8, tb)

    # second sublane tile: row 8 = t, row 9 = 1 (bias fold), rows 10..15 = 0
    r = lax.broadcasted_iota(jnp.int32, (8, tb), 0)
    tile2 = jnp.where(r == 0, jnp.broadcast_to(t, (8, tb)), (r == 1).astype(f32))
    enc = jnp.concatenate([sincos, tile2], axis=0)          # (16, tb), tile-aligned
    enc_b = enc.astype(bf16)

    def dot_bf16(w, x):
        return jnp.dot(w.astype(bf16), x, preferred_element_type=f32)

    # layer 0: (H,16)@(16,tb); bias folded in through the ones row (col 9)
    h = dot_bf16(p_ref[0:H, 0:KENC], enc_b)
    h = jnp.maximum(h, 0.0)

    # layer 1: (H,H)@(H,tb)
    h = dot_bf16(p_ref[H:2 * H, 0:H], h.astype(bf16)) + p_ref[H:2 * H, BCOL:BCOL + 1]
    h = jnp.maximum(h, 0.0)

    # layer 2 (skip): cat([h, enc]) @ W2 == two K-segment dots of the same weight;
    # the layer bias is folded into the enc segment (col 41) via the ones row.
    h = (dot_bf16(p_ref[2 * H:3 * H, 0:H], h.astype(bf16))
         + dot_bf16(p_ref[2 * H:3 * H, H:H + KENC], enc_b))
    h = jnp.maximum(h, 0.0)

    # last layer in f32 (weights ~U[0,1e-6)): (OUT,H)@(H,tb) -> quaternion logits
    y = (jnp.dot(p_ref[3 * H:3 * H + OUT, 0:H], h, preferred_element_type=f32)
         + p_ref[3 * H:3 * H + OUT, BCOL:BCOL + 1])

    th = jnp.tanh(y)                                        # tanh computed once
    row = lax.broadcasted_iota(jnp.int32, (OUT, tb), 0)
    feat = jnp.where(row == 0, 1.0 - th, th)                # q0 = 1 - tanh, rest = tanh

    # quaternion normalization: feat * rsqrt(sum(feat^2))  (ref: feat/(||feat||+1e-18))
    sumsq = jnp.sum(feat * feat, axis=0, keepdims=True)     # (1, tb)
    out_ref[...] = feat * lax.rsqrt(sumsq + 1e-30)


# ----------------------------------- wrapper ----------------------------------------
def rotsnet_forward(index, param_slab, *, block_n=4096):
    idx = jnp.asarray(index, jnp.float32).reshape(-1)
    n = idx.shape[0]

    # lane-block: multiple of 128, <= block_n, and (when the padded batch allows)
    # >= 2 grid steps so both v7x TensorCores get work on the "parallel" axis.
    n128 = pl.cdiv(n, 128) * 128
    bn = max(128, (int(block_n) // 128) * 128)
    if n128 >= 256:
        tb = max(128, min(bn, ((n128 // 2) // 128) * 128))
    else:
        tb = 128
    n_pad = pl.cdiv(n128, tb) * tb
    grid_n = n_pad // tb

    idx_p = jnp.zeros((1, n_pad), jnp.float32).at[0, :n].set(idx)

    cost = pl.CostEstimate(
        flops=2 * n_pad * (KENC * H + H * H + (H + KENC) * H + H * OUT),
        transcendentals=n_pad * (8 + OUT + 1),               # sin x8, tanh x4, rsqrt
        bytes_accessed=(1 + OUT) * n_pad * 4 + param_slab.size * 4,
    )

    out = pl.pallas_call(
        rotsnet_kernel,
        out_shape=jax.ShapeDtypeStruct((OUT, n_pad), jnp.float32),
        grid=(grid_n,),
        in_specs=[
            pl.BlockSpec((1, tb), lambda i: (0, i)),            # batch block on lanes
            pl.BlockSpec(param_slab.shape, lambda i: (0, 0)),   # packed params, resident
        ],
        out_specs=pl.BlockSpec((OUT, tb), lambda i: (0, i)),    # lane-dense output store
        compiler_params=pltpu.CompilerParams(
            dimension_semantics=("parallel",)),
        cost_estimate=cost,
    )(idx_p, param_slab)

    # slice/transpose stays outside the kernel (keeps the store lane-dense);
    # for very large N consume the (4, N) layout downstream instead.
    return out[:, :n].T                                         # (N, 4)


# ------------------------------ pure-JAX reference ----------------------------------
def rotsnet_reference(index, params):
    idx = jnp.asarray(index, jnp.float32).reshape(-1, 1)
    t = 2.0 * (idx - MIN_INDEX) / (N_IMG - MIN_INDEX) - 1.0
    freq = (2.0 ** jnp.arange(POSENET_FREQ, dtype=jnp.float32)) * jnp.pi
    spec = t * freq[None, :]
    enc = jnp.concatenate([t, jnp.sin(spec), jnp.cos(spec)], axis=-1)
    h = enc
    n = len(params)
    for li, (w, b) in enumerate(params):
        if li in SKIP:
            h = jnp.concatenate([h, enc], axis=-1)
        h = jnp.dot(h, w, precision=jax.lax.Precision.HIGHEST) + b
        if li == n - 1:
            h = jnp.concatenate([1.0 - jnp.tanh(h[:, 0:1]), jnp.tanh(h[:, 1:])], axis=-1)
        else:
            h = jnp.maximum(h, 0.0)
    nrm = jnp.linalg.norm(h, axis=-1, keepdims=True)
    return h / (nrm + 1e-18)


# ------------------------------------- main ------------------------------------------
if __name__ == "__main__":
    key = jax.random.PRNGKey(0)
    kp, ki = jax.random.split(key)
    params = init_params(kp)
    slab = pack_params(params)            # packed once -> persistent device array

    fwd = jax.jit(rotsnet_forward, static_argnames=("block_n",))

    # realistic small batch of frame indices (forward takes a list/array of indices)
    index = jnp.array([0, 3, 17, 25, 42, 63, 77, 99], dtype=jnp.int32)
    out = jax.block_until_ready(fwd(index, slab))
    ref = rotsnet_reference(index, params)

    assert out.shape == (index.shape[0], 4)
    assert bool(jnp.all(jnp.isfinite(out)))
    # tolerance budget: bf16 hidden-layer dots + EUP sin/tanh/rsqrt vs HIGHEST-f32 ref;
    # all funnel through the tiny f32 last layer, so error is far below 5e-3.
    assert jnp.allclose(out, ref, rtol=5e-3, atol=5e-3), float(jnp.max(jnp.abs(out - ref)))
    assert jnp.allclose(jnp.linalg.norm(out, axis=-1), 1.0, atol=5e-3)

    # larger batch: exercises batch padding and the multi-step "parallel" grid
    index2 = jax.random.randint(ki, (300,), 0, N_IMG, dtype=jnp.int32)
    out2 = jax.block_until_ready(fwd(index2, slab))
    ref2 = rotsnet_reference(index2, params)
    assert out2.shape == (300, 4)
    assert jnp.allclose(out2, ref2, rtol=5e-3, atol=5e-3), float(jnp.max(jnp.abs(out2 - ref2)))

    print("KERNEL_OK")
</pallas_src>

<mosaic_0001>
module attributes {stable_mosaic.version = 11 : i64} {
  func.func @rotsnet_kernel(%arg0: i32, %arg1: memref<1x128xf32, #tpu.memory_space<vmem>>, %arg2: memref<128x48xf32, #tpu.memory_space<vmem>>, %arg3: memref<4x128xf32, #tpu.memory_space<vmem>>) attributes {dimension_semantics = [#tpu.dimension_semantics<parallel>], iteration_bounds = array<i64: 1>, scalar_prefetch = 0 : i64, scratch_operands = 0 : i64, tpu.core_type = #tpu.core_type<tc>, window_params = [{transform_indices = @transform_0, window_bounds = array<i64: 1, 128>}, {pipeline_mode = #tpu.pipeline_mode<synchronous>, transform_indices = @transform_1, window_bounds = array<i64: 128, 48>}, {transform_indices = @transform_2, window_bounds = array<i64: 4, 128>}]} {
    %c0 = arith.constant 0 : index
    %c0_0 = arith.constant 0 : index
    %0 = vector.load %arg1[%c0, %c0_0] : memref<1x128xf32, #tpu.memory_space<vmem>>, vector<1x128xf32>
    %cst = arith.constant 0.000000e+00 : f32
    %1 = vector.broadcast %cst : f32 to vector<1x128xf32>
    %2 = arith.subf %0, %1 : vector<1x128xf32>
    %cst_1 = arith.constant 2.000000e+00 : f32
    %3 = vector.broadcast %cst_1 : f32 to vector<1x128xf32>
    %4 = arith.mulf %3, %2 : vector<1x128xf32>
    %cst_2 = arith.constant 1.000000e+02 : f32
    %5 = vector.broadcast %cst_2 : f32 to vector<1x128xf32>
    %6 = arith.divf %4, %5 : vector<1x128xf32>
    %cst_3 = arith.constant 1.000000e+00 : f32
    %7 = vector.broadcast %cst_3 : f32 to vector<1x128xf32>
    %8 = arith.subf %6, %7 : vector<1x128xf32>
    %c0_4 = arith.constant 0 : index
    %c44 = arith.constant 44 : index
    %9 = vector.load %arg2[%c0_4, %c44] : memref<128x48xf32, #tpu.memory_space<vmem>>, vector<8x1xf32>
    %c0_5 = arith.constant 0 : index
    %c45 = arith.constant 45 : index
    %10 = vector.load %arg2[%c0_5, %c45] : memref<128x48xf32, #tpu.memory_space<vmem>>, vector<8x1xf32>
    %11 = vector.broadcast %9 : vector<8x1xf32> to vector<8x128xf32>
    %12 = vector.broadcast %8 : vector<1x128xf32> to vector<8x128xf32>
    %13 = arith.mulf %11, %12 : vector<8x128xf32>
    %14 = vector.broadcast %10 : vector<8x1xf32> to vector<8x128xf32>
    %15 = arith.addf %13, %14 : vector<8x128xf32>
    %16 = math.sin %15 : vector<8x128xf32>
    %17 = tpu.iota {dimensions = array<i32: 0>} : vector<8x128xi32>
    %c0_i32 = arith.constant 0 : i32
    %18 = vector.broadcast %c0_i32 : i32 to vector<8x128xi32>
    %19 = arith.cmpi eq, %17, %18 : vector<8x128xi32>
    %20 = vector.shape_cast %8 : vector<1x128xf32> to vector<1x128xf32>
    %21 = vector.broadcast %20 : vector<1x128xf32> to vector<8x128xf32>
    %c1_i32 = arith.constant 1 : i32
    %22 = vector.broadcast %c1_i32 : i32 to vector<8x128xi32>
    %23 = arith.cmpi eq, %17, %22 : vector<8x128xi32>
    %24 = arith.extui %23 : vector<8x128xi1> to vector<8x128xi32>
    %25 = arith.sitofp %24 : vector<8x128xi32> to vector<8x128xf32>
    %26 = arith.select %19, %21, %25 : vector<8x128xi1>, vector<8x128xf32>
    %27 = tpu.concatenate %16, %26 in 0 : vector<8x128xf32>, vector<8x128xf32> -> vector<16x128xf32>
    %28 = arith.truncf %27 : vector<16x128xf32> to vector<16x128xbf16>
    %c0_6 = arith.constant 0 : index
    %c0_7 = arith.constant 0 : index
    %29 = vector.load %arg2[%c0_6, %c0_7] : memref<128x48xf32, #tpu.memory_space<vmem>>, vector<32x16xf32>
    %30 = arith.truncf %29 : vector<32x16xf32> to vector<32x16xbf16>
    %cst_8 = arith.constant dense<0.000000e+00> : vector<32x128xf32>
    %31 = tpu.matmul %30, %28, %cst_8 {dimension_numbers = #tpu.dot_dimension_numbers<[1], [0], [0], [1], [0, 0, 1, 1], [], []>} : vector<32x16xbf16>, vector<16x128xbf16>, vector<32x128xf32> -> vector<32x128xf32>
    %cst_9 = arith.constant 0.000000e+00 : f32
    %32 = vector.broadcast %cst_9 : f32 to vector<32x128xf32>
    %33 = arith.maximumf %31, %32 : vector<32x128xf32>
    %c32 = arith.constant 32 : index
    %c0_10 = arith.constant 0 : index
    %34 = vector.load %arg2[%c32, %c0_10] : memref<128x48xf32, #tpu.memory_space<vmem>>, vector<32x32xf32>
    %35 = arith.truncf %33 : vector<32x128xf32> to vector<32x128xbf16>
    %36 = arith.truncf %34 : vector<32x32xf32> to vector<32x32xbf16>
    %cst_11 = arith.constant dense<0.000000e+00> : vector<32x128xf32>
    %37 = tpu.matmul %36, %35, %cst_11 {dimension_numbers = #tpu.dot_dimension_numbers<[1], [0], [0], [1], [0, 0, 1, 1], [], []>} : vector<32x32xbf16>, vector<32x128xbf16>, vector<32x128xf32> -> vector<32x128xf32>
    %c32_12 = arith.constant 32 : index
    %c47 = arith.constant 47 : index
    %38 = vector.load %arg2[%c32_12, %c47] : memref<128x48xf32, #tpu.memory_space<vmem>>, vector<32x1xf32>
    %39 = vector.broadcast %38 : vector<32x1xf32> to vector<32x128xf32>
    %40 = arith.addf %37, %39 : vector<32x128xf32>
    %cst_13 = arith.constant 0.000000e+00 : f32
    %41 = vector.broadcast %cst_13 : f32 to vector<32x128xf32>
    %42 = arith.maximumf %40, %41 : vector<32x128xf32>
    %c64 = arith.constant 64 : index
    %c0_14 = arith.constant 0 : index
    %43 = vector.load %arg2[%c64, %c0_14] : memref<128x48xf32, #tpu.memory_space<vmem>>, vector<32x32xf32>
    %44 = arith.truncf %42 : vector<32x128xf32> to vector<32x128xbf16>
    %45 = arith.truncf %43 : vector<32x32xf32> to vector<32x32xbf16>
    %cst_15 = arith.constant dense<0.000000e+00> : vector<32x128xf32>
    %46 = tpu.matmul %45, %44, %cst_15 {dimension_numbers = #tpu.dot_dimension_numbers<[1], [0], [0], [1], [0, 0, 1, 1], [], []>} : vector<32x32xbf16>, vector<32x128xbf16>, vector<32x128xf32> -> vector<32x128xf32>
    %c64_16 = arith.constant 64 : index
    %c32_17 = arith.constant 32 : index
    %47 = vector.load %arg2[%c64_16, %c32_17] : memref<128x48xf32, #tpu.memory_space<vmem>>, vector<32x16xf32>
    %48 = arith.truncf %47 : vector<32x16xf32> to vector<32x16xbf16>
    %cst_18 = arith.constant dense<0.000000e+00> : vector<32x128xf32>
    %49 = tpu.matmul %48, %28, %cst_18 {dimension_numbers = #tpu.dot_dimension_numbers<[1], [0], [0], [1], [0, 0, 1, 1], [], []>} : vector<32x16xbf16>, vector<16x128xbf16>, vector<32x128xf32> -> vector<32x128xf32>
    %50 = arith.addf %46, %49 : vector<32x128xf32>
    %cst_19 = arith.constant 0.000000e+00 : f32
    %51 = vector.broadcast %cst_19 : f32 to vector<32x128xf32>
    %52 = arith.maximumf %50, %51 : vector<32x128xf32>
    %c96 = arith.constant 96 : index
    %c0_20 = arith.constant 0 : index
    %53 = vector.load %arg2[%c96, %c0_20] : memref<128x48xf32, #tpu.memory_space<vmem>>, vector<4x32xf32>
    %cst_21 = arith.constant dense<0.000000e+00> : vector<4x128xf32>
    %54 = tpu.matmul %53, %52, %cst_21 {dimension_numbers = #tpu.dot_dimension_numbers<[1], [0], [0], [1], [0, 0, 1, 1], [], []>} : vector<4x32xf32>, vector<32x128xf32>, vector<4x128xf32> -> vector<4x128xf32>
    %c96_22 = arith.constant 96 : index
    %c47_23 = arith.constant 47 : index
    %55 = vector.load %arg2[%c96_22, %c47_23] : memref<128x48xf32, #tpu.memory_space<vmem>>, vector<4x1xf32>
    %56 = vector.broadcast %55 : vector<4x1xf32> to vector<4x128xf32>
    %57 = arith.addf %54, %56 : vector<4x128xf32>
    %58 = math.tanh %57 : vector<4x128xf32>
    %59 = tpu.iota {dimensions = array<i32: 0>} : vector<4x128xi32>
    %c0_i32_24 = arith.constant 0 : i32
    %60 = vector.broadcast %c0_i32_24 : i32 to vector<4x128xi32>
    %61 = arith.cmpi eq, %59, %60 : vector<4x128xi32>
    %cst_25 = arith.constant 1.000000e+00 : f32
    %62 = vector.broadcast %cst_25 : f32 to vector<4x128xf32>
    %63 = arith.subf %62, %58 : vector<4x128xf32>
    %64 = arith.select %61, %63, %58 : vector<4x128xi1>, vector<4x128xf32>
    %65 = arith.mulf %64, %64 : vector<4x128xf32>
    %cst_26 = arith.constant dense<0.000000e+00> : vector<128xf32>
    %66 = vector.multi_reduction <add>, %65, %cst_26 [0] : vector<4x128xf32> to vector<128xf32>
    %67 = vector.shape_cast %66 : vector<128xf32> to vector<1x128xf32>
    %cst_27 = arith.constant 1.000000e-30 : f32
    %68 = vector.broadcast %cst_27 : f32 to vector<1x128xf32>
    %69 = arith.addf %67, %68 : vector<1x128xf32>
    %70 = math.rsqrt %69 : vector<1x128xf32>
    %71 = vector.broadcast %70 : vector<1x128xf32> to vector<4x128xf32>
    %72 = arith.mulf %64, %71 : vector<4x128xf32>
    %c0_28 = arith.constant 0 : index
    %c0_29 = arith.constant 0 : index
    %73 = vector.load %arg3[%c0_28, %c0_29] : memref<4x128xf32, #tpu.memory_space<vmem>>, vector<4x128xf32>
    tpu.vector_store %arg3[%c0_28, %c0_29], %72 {strides = array<i32>} : memref<4x128xf32, #tpu.memory_space<vmem>>, vector<4x128xf32>,
    return
  }
  func.func @transform_0(%arg0: i32) -> (i32, i32) {
    %c0_i32 = arith.constant 0 : i32
    %c0_i32_0 = arith.constant 0 : i32
    return %c0_i32, %arg0 : i32, i32
  }
  func.func @transform_1(%arg0: i32) -> (i32, i32) {
    %c0_i32 = arith.constant 0 : i32
    %c0_i32_0 = arith.constant 0 : i32
    %c0_i32_1 = arith.constant 0 : i32
    return %c0_i32, %c0_i32_0 : i32, i32
  }
  func.func @transform_2(%arg0: i32) -> (i32, i32) {
    %c0_i32 = arith.constant 0 : i32
    %c0_i32_0 = arith.constant 0 : i32
    return %c0_i32, %arg0 : i32, i32
  }
}

</mosaic_0001>

<bundles_post_ra>
// kernel: rotsnet_forward.1
= control target key start
LH: loop header
LB: loop body
LE: loop exit
PB: predicated region body
PF: predicated region fallthrough
CT: control target
= control target key end

     0   :  { %v639_v0 = vmov 44   ;;  %v640_v2 = vmov 45   ;;  %vm153_vm0 = vcmask 130048   ;;  %v24_v6 = vlaneseq  ;;  %s649_s8 = smov 96   ;;  %s761_s1 = inlined_call_operand.vmem [shape: f32[128,48], index: 1, kind: input, shape index: {}]   ;;  %s762_s0 = inlined_call_operand.vmem [shape: f32[1,128], index: 0, kind: input, shape index: {}]   ;;  %s763_s2 = inlined_call_operand.vmem [shape: f32[4,128], index: 2, kind: output, shape index: {}]  }
   0x1   :  { %627 = vset.pattern.permute.xlu0 %v639_v0  ;;  %v17_v1 = vld [vmem:[%s761_s1] sm:$0xff]  ;;  %v148_v3 = vld [vmem:[%s761_s1 + $0x8] sm:$0xff]  ;;  %v641_v27 = vmov 683565275   ;;  %v642_v29 = vmov 2475754826  }
   0x2   :  { %20 = vperm.xlu0 %627, %v17_v1   ;;  %v151_v4 = vpack.c.bf16 %v148_v3, %v17_v1  ;;  %v12_v5 = vld [vmem:[%s762_s0] sm:$0x1]  ;;  %v677_v8 = vshrl.u32 %v24_v6, 7  ;;  %v643_v32 = vmov 2131351028  }
   0x3   :  { %v13_v7 = vmul.f32 2.0, %v12_v5  ;;  %v644_v35 = vmov 2102212464   ;;  %v645_v38 = vmov 920167782  }
   0x4   :  { %563 = vmatprep.mubr.msk.bf16.mxu1 %vm153_vm0, %v151_v4  ;;  %v26_v10 = vsub.s32 0, %v677_v8  ;;  %v646_v41 = vmov 1326507024   ;;  %vm142_vm10 = vcmp.eq.s32.totalorder %v677_v8, 1  ;;  %vm141_vm11 = vcmp.eq.s32.totalorder %v677_v8, 0 }
   0x5   :  { %v15_v9 = vmul.f32 0.01, %v13_v7 }
   0x6   :  { %628 = vset.pattern.permute.xlu0 %v640_v2 }
   0x7   :  { %31 = vperm.xlu0 %628, %v17_v1   ;;  %v527_v11 = vadd.f32 -1.0, %v15_v9 }
   0x9   :  { %v680_v13 = vrot.slane %v527_v11, %v26_v10 }
  0x81   :  { %v21_v12 = vpop.permute.xlu0 %20 }
  0x82   :  { %v29_v14 = vmul.f32 %v680_v13, %v21_v12 }
  0x86   :  { %v32_v15 = vpop.permute.xlu0 %31 }
  0x87   :  { %v683_v16 = vadd.f32 %v32_v15, %v29_v14 }
  0x89   :  { %v38_v17 = vand.u32 2139095040, %v683_v16  ;;  %v35_v21 = vand.u32 2147483647, %v683_v16  ;;  %vm37_vm8 = vcmp.lt.s32.totalorder %v683_v16, 0  ;;  %vm127_vm15 = vweird.f32 %v683_v16 }
  0x8b   :  { %v39_v18 = vshrl.u32 %v38_v17, 23  ;;  %v42_v24 = vand.u32 8388607, %v35_v21  ;;  %vm36_vm9 = vcmp.le.f32.partialorder %v35_v21, 0.7853982 }
  0x8d   :  { %v528_v19 = vadd.s32 4294967169, %v39_v18  ;;  %v43_v43 = vor.u32 8388608, %v42_v24 }
  0x8f   :  { %v45_v20 = vadd.s32 1, %v528_v19  ;;  %v83_v57 = vshll.u32 %v43_v43, 8 }
  0x91   :  { %vm46_vm1 = vcmp.gt.s32.totalorder %v45_v20, 0 }
  0x92   :  { %v47_v22 = vsel %vm46_vm1, %v45_v20, 0  ;;  %vm241_vm1 = vcmask 261120  }
  0x93   :  { %v49_v23 = vand.u32 31, %v47_v22  ;;  %v48_v26 = vshrl.u32 %v47_v22, 5 }
  0x95   :  { %v50_v25 = vsub.s32 32, %v49_v23  ;;  %v52_v28 = vshll.u32 %v641_v27, %v49_v23  ;;  %v55_v30 = vshll.u32 %v642_v29, %v49_v23  ;;  %v58_v34 = vshll.u32 %v643_v32, %v49_v23 }
  0x96   :  { %v61_v37 = vshll.u32 %v644_v35, %v49_v23  ;;  %v64_v40 = vshll.u32 %v645_v38, %v49_v23  ;;  %vm67_vm2 = vcmp.lt.s32.totalorder %v48_v26, 1  ;;  %vm70_vm3 = vcmp.lt.s32.totalorder %v48_v26, 4 }
  0x97   :  { %v53_v31 = vshrl.u32 %v642_v29, %v50_v25  ;;  %v56_v33 = vshrl.u32 %v643_v32, %v50_v25  ;;  %v59_v36 = vshrl.u32 %v644_v35, %v50_v25  ;;  %v62_v39 = vshrl.u32 %v645_v38, %v50_v25 }
  0x98   :  { %v65_v42 = vshrl.u32 %v646_v41, %v50_v25  ;;  %v51_v52 = vshrl.u32 %v641_v27, %v50_v25  ;;  %vm69_vm4 = vcmp.lt.s32.totalorder %v48_v26, 3  ;;  %vm68_vm5 = vcmp.lt.s32.totalorder %v48_v26, 2 }
  0x99   :  { %v54_v44 = vor.u32 %v53_v31, %v52_v28  ;;  %v57_v45 = vor.u32 %v56_v33, %v55_v30  ;;  %v60_v46 = vor.u32 %v59_v36, %v58_v34  ;;  %v63_v47 = vor.u32 %v62_v39, %v61_v37 }
  0x9a   :  { %v66_v48 = vor.u32 %v65_v42, %v64_v40  ;;  %v647_v42 = vmov 0.0  }
  0x9b   :  { %v72_v49 = vsel %vm70_vm3, %v60_v46, 2102212464  ;;  %v75_v50 = vsel %vm67_vm2, %v54_v44, %v57_v45  ;;  %v79_v51 = vsel %vm67_vm2, %v57_v45, %v60_v46  ;;  %v76_v53 = vsel %vm70_vm3, %v63_v47, 920167782 }
  0x9c   :  { %v80_v54 = vsel %vm70_vm3, %v66_v48, 1326507024  ;;  %v77_v55 = vsel %vm69_vm4, %v60_v46, %v76_v53  ;;  %v71_v58 = vsel %vm67_vm2, %v51_v52, %v54_v44  ;;  %v73_v59 = vsel %vm69_vm4, %v57_v45, %v72_v49 }
  0x9d   :  { %v81_v56 = vsel %vm69_vm4, %v63_v47, %v80_v54  ;;  %v78_v60 = vsel %vm68_vm5, %v75_v50, %v77_v55  ;;  %v74_v2 = vsel %vm68_vm5, %v71_v58, %v73_v59  ;;  %v532_v43 = vsel %vm142_vm10, 1.0, %v647_v42  ;;  %v149_v50 = vld [vmem:[%s761_s1 + $0x10] sm:$0xff]  ;;  %v733_v59 = vld [vmem:[%s761_s1 + $0x60] sm:$0xf] }
  0x9e   :  { %v82_v61 = vsel %vm68_vm5, %v79_v51, %v81_v56  ;;  %v692_v0 = vmul.u32.u64.low %v83_v57, %v78_v60  ;;  %v693_v1 = vmul.u32.u64.high %v83_v57, %v78_v60, %v692_v0  ;;  %v90_v4 = vmul.u32 %v83_v57, %v74_v2  ;;  %v150_v51 = vld [vmem:[%s761_s1 + $0x18] sm:$0xff]  ;;  %v215_v54 = vld [vmem:[%s761_s1 + $0x30] sm:$0xff]  ;;  %v301_v60 = vld [vmem:[%s761_s1 + $0x40] sm:$0xff] }
  0x9f   :  { %v689_v62 = vmul.u32.u64.low %v83_v57, %v82_v61  ;;  %v690_v63 = vmul.u32.u64.high %v83_v57, %v82_v61, %v689_v62  ;;  %v145_v46 = vsel %vm141_vm11, %v680_v13, %v532_v43  ;;  %v152_v53 = vpack.c.bf16 %v150_v51, %v149_v50  ;;  %v213_v13 = vld [vmem:[%s761_s1 + $0x20] sm:$0xff]  ;;  %v216_v56 = vld [vmem:[%s761_s1 + $0x38] sm:$0xff]  ;;  %v302_v61 = vld [vmem:[%s761_s1 + $0x48] sm:$0xff] }
  0xa0   :  { %v93_v3 = vadd.s32 1, %v693_v1  ;;  %v220_v57 = vpack.c.bf16 %v216_v56, %v215_v54  ;;  %v648_v58 = vmov 47   ;;  %v307_v62 = vpack.c.bf16 %v302_v61, %v301_v60 }
  0xa1   :  { %vm92_vm6 = vc.u32 %v690_v63, %v692_v0  ;;  %v91_v19 = vadd.s32 %v692_v0, %v690_v63  ;;  %629 = vset.pattern.permute.xlu1 %v648_v58  ;;  %630 = vset.pattern.permute.xlu0 %v648_v58  ;;  %v303_v63 = vld [vmem:[%s761_s1 + $0x50] sm:$0xff]  ;;  %v304_v0 = vld [vmem:[%s761_s1 + $0x58] sm:$0xff]  ;;  %vm511_vm2 = vcmask 1043456  }
  0xa2   :  { %v94_v5 = vsel %vm92_vm6, %v93_v3, %v693_v1  ;;  %223 = vperm.xlu1 %629, %v213_v13   ;;  %238 = vperm.xlu0 %630, %v216_v56   ;;  %v308_v1 = vpack.c.bf16 %v304_v0, %v303_v63 }
  0xa3   :  { %v95_v6 = vadd.s32 %v94_v5, %v90_v4 }
  0xa5   :  { %v96_v7 = vadd.s32 536870912, %v95_v6 }
  0xa6   :  { %432 = vperm.xlu0 %630, %v733_v59  }
  0xa7   :  { %v97_v9 = vshrl.u32 %v96_v7, 30 }
  0xa9   :  { %v98_v10 = vshll.u32 %v97_v9, 30  ;;  %v121_v32 = vsub.s32 4, %v97_v9 }
  0xab   :  { %v99_v11 = vsub.s32 %v95_v6, %v98_v10  ;;  %v122_v35 = vsel %vm37_vm8, %v121_v32, %v97_v9 }
  0xac   :  { %v124_v37 = vsel %vm36_vm9, 0, %v122_v35 }
  0xad   :  { %v101_v12 = vsub.s32 0, %v99_v11  ;;  %v128_v38 = vadd.s32 3, %v124_v37 }
  0xaf   :  { %v529_v14 = vmin.u32 %v101_v12, %v99_v11  ;;  %v129_v39 = vand.u32 3, %v128_v38 }
  0xb1   :  { %v103_v15 = vclz %v529_v14  ;;  %vm134_vm12 = vcmp.eq.s32.totalorder %v129_v39, 2  ;;  %vm131_vm13 = vcmp.eq.s32.totalorder %v129_v39, 0  ;;  %vm130_vm14 = vcmp.lt.s32.totalorder %v129_v39, 2 }
  0xb3   :  { %v530_v17 = vadd.s32 4294967294, %v103_v15 }
  0xb5   :  { %vm531_vm7 = vcmp.lt.s32.totalorder %v530_v17, 0 }
  0xb6   :  { %v106_v18 = vsel %vm531_vm7, 0, %v530_v17 }
  0xb7   :  { %v107_v20 = vsub.s32 32, %v106_v18  ;;  %v111_v22 = vsub.s32 4294967266, %v106_v18  ;;  %v108_v23 = vshll.u32 %v99_v11, %v106_v18 }
  0xb9   :  { %v109_v24 = vshrl.u32 %v91_v19, %v107_v20  ;;  %v112_v25 = vadd.s32 127, %v111_v22 }
  0xbb   :  { %v110_v26 = vor.u32 %v109_v24, %v108_v23  ;;  %v113_v27 = vshll.u32 %v112_v25, 23 }
  0xbd   :  { %v114_v28 = vor.u32 4788187, %v113_v27  ;;  %v117_v30 = vcvt.s32.f32 %v110_v26 }
  0xbf   :  { %v115_v29 = vand.u32 2147483647, %v114_v28 }
  0xc1   :  { %v118_v31 = vmul.f32 %v117_v30, %v115_v29 }
  0xc3   :  { %v119_v33 = vxor.u32 2147483648, %v118_v31 }
  0xc5   :  { %v120_v34 = vsel %vm37_vm8, %v119_v33, %v118_v31 }
  0xc6   :  { %v123_v36 = vsel %vm36_vm9, %v683_v16, %v120_v34  ;;  %v214_v16 = vld [vmem:[%s761_s1 + $0x28] sm:$0xff] }
  0xc7   :  { %631 = vcosq.f32 %v123_v36  ;;  %v219_v55 = vpack.c.bf16 %v214_v16, %v213_v13  ;;  %228 = vperm.xlu1 %629, %v214_v16  }
  0xc8   :  { %633 = vsinq.f32 %v123_v36  ;;  %v650_v36 = vmov 0.0|0.0  }
  0xcb   :  { %233 = vperm.xlu1 %629, %v215_v54  }
  0xcf   :  { %311 = vrot.lane.b32.xlu1 %v307_v62, %s649_s8 }
  0xd1   :  { %v632_v40 = vpop.eup %631 }
  0xd2   :  { %v634_v41 = vpop.eup %633  ;;  %v135_v44 = vxor.u32 2147483648, %v632_v40 }
  0xd3   :  { %v132_v21 = vxor.u32 2147483648, %v634_v41  ;;  %313 = vrot.lane.b32.xlu1 %v308_v1, %s649_s8 }
  0xd4   :  { %v136_v45 = vsel %vm134_vm12, %v135_v44, %v634_v41 }
  0xd5   :  { %v133_v47 = vsel %vm131_vm13, %v632_v40, %v132_v21 }
  0xd6   :  { %v137_v48 = vsel %vm130_vm14, %v133_v47, %v136_v45 }
  0xd7   :  { %v138_v49 = vsel %vm127_vm15, nan, %v137_v48 }
  0xd8   :  { %v146_v52 = vpack.c.bf16 %v145_v46, %v138_v49 }
  0xda   :  { %561 = vmatprep.subr.bf16.mxu1 %v146_v52  ;;  %575 = vmatprep.subr.bf16.mxu0 %v146_v52 }
  0xdb   :  { %562 = vmatpush3.bf16.msra.mxu1 %v146_v52  ;;  %576 = vmatpush3.bf16.msra.mxu0 %v146_v52 }
  0xde   :  { %564 = vmatmul.mubr.msk.bf16.vlgmr.msra.gmra.mrb[0].mxu1 %vm153_vm0, %v152_v53 }
  0xdf   :  { %571 = vmatprep.mubr.msk.bf16.mxu1 %vm241_vm1, %v219_v55 }
 0x121   :  { %v224_v14 = vpop.permute.xlu1 %223  ;;  %v239_v22 = vpop.permute.xlu0 %238 }
 0x125   :  { %v433_v47 = vpop.permute.xlu0 %432 }
 0x146   :  { %v229_v15 = vpop.permute.xlu1 %228 }
 0x14a   :  { %v234_v17 = vpop.permute.xlu1 %233 }
 0x14e   :  { %v312_v18 = vpop.permute.xlu1 %311 }
 0x14f   :  { %577 = vmatprep.mubr.msk.bf16.mxu0 %vm153_vm0, %v312_v18 }
 0x152   :  { %v314_v19 = vpop.permute.xlu1 %313 }
 0x153   :  { %578 = vmatmul.mubr.msk.bf16.vlgmr.msra.gmra.mrb[0].mxu0 %vm153_vm0, %v314_v19  ;;  %vm651_vm0 = vmmov 0  }
 0x154   :  { %585 = vmatprep.mubr.msk.bf16.mxu0 %vm241_vm1, %v307_v62 }
 0x1b1   :  { %v565_v2 = vpop.f32.mrb[0].mxu1 }
 0x1b2   :  { %v194_v3 = vpop.f32.mrb[1].mxu1  ;;  %v211_v5 = vmax.f32 %v565_v2, 0.0 }
 0x1b3   :  { %v566_v4 = vpop.f32.mrb[2].mxu1  ;;  %v209_v9 = vmax.f32 %v194_v3, 0.0 }
 0x1b4   :  { %v212_v6 = vmax.f32 %v566_v4, 0.0  ;;  %v197_v7 = vpop.f32.mrb[3].mxu1 }
 0x1b5   :  { %v210_v10 = vmax.f32 %v197_v7, 0.0 }
 0x1b6   :  { %v218_v11 = vpack.c.bf16 %v212_v6, %v211_v5 }
 0x1b7   :  { %v217_v12 = vpack.c.bf16 %v210_v10, %v209_v9 }
 0x1b9   :  { %567 = vmatprep.subr.bf16.mxu1 %v217_v12 }
 0x1ba   :  { %568 = vmatpush3.bf16.msra.mxu1 %v217_v12 }
 0x1bb   :  { %569 = vmatprep.subr.bf16.mxu1 %v218_v11 }
 0x1be   :  { %570 = vmatpush3.bf16.msra.mxu1 %v218_v11 }
 0x1bf   :  { %600 = vmatprep.subr.bf16.mxu1 %v650_v36 }
 0x1c1   :  { %572 = vmatmul.mubr.msk.bf16.vlgmr.msra.gmra.mrb[4].mxu1 %vm241_vm1, %v220_v57 }
 0x1c2   :  { %597 = vmatprep.mubr.msk.f32.mxu1 %vm651_vm0, %v647_v42 }
 0x294   :  { %v573_v20 = vpop.f32.mrb[4].mxu1 }
 0x295   :  { %v291_v23 = vadd.f32 %v573_v20, %v234_v17  ;;  %v282_v24 = vpop.f32.mrb[5].mxu1 }
 0x296   :  { %v283_v25 = vadd.f32 %v282_v24, %v224_v14  ;;  %v574_v26 = vpop.f32.mrb[6].mxu1 }
 0x297   :  { %v294_v27 = vadd.f32 %v574_v26, %v239_v22  ;;  %v285_v28 = vpop.f32.mrb[7].mxu1  ;;  %v299_v30 = vmax.f32 %v291_v23, 0.0 }
 0x298   :  { %v286_v29 = vadd.f32 %v285_v28, %v229_v15  ;;  %v297_v32 = vmax.f32 %v283_v25, 0.0 }
 0x299   :  { %v300_v31 = vmax.f32 %v294_v27, 0.0 }
 0x29a   :  { %v298_v33 = vmax.f32 %v286_v29, 0.0 }
 0x29b   :  { %v306_v34 = vpack.c.bf16 %v300_v31, %v299_v30 }
 0x29c   :  { %v305_v35 = vpack.c.bf16 %v298_v33, %v297_v32 }
 0x29e   :  { %581 = vmatprep.subr.bf16.mxu0 %v305_v35 }
 0x29f   :  { %582 = vmatpush3.bf16.msra.mxu0 %v305_v35 }
 0x2a0   :  { %583 = vmatprep.subr.bf16.mxu0 %v306_v34 }
 0x2a3   :  { %584 = vmatpush3.bf16.msra.mxu0 %v306_v34 }
 0x2a6   :  { %586 = vmatmul.mubr.msk.bf16.vlgmr.msra.gmra.mrb[0].mxu0 %vm241_vm1, %v308_v1 }
 0x379   :  { %v587_v37 = vpop.f32.mrb[0].mxu0 }
 0x37a   :  { %v410_v38 = vpop.f32.mrb[1].mxu0  ;;  %v427_v40 = vmax.f32 %v587_v37, 0.0 }
 0x37b   :  { %v588_v39 = vpop.f32.mrb[2].mxu0  ;;  %v425_v44 = vmax.f32 %v410_v38, 0.0 }
 0x37c   :  { %v428_v41 = vmax.f32 %v588_v39, 0.0  ;;  %v413_v43 = vpop.f32.mrb[3].mxu0 }
 0x37d   :  { %v426_v21 = vmax.f32 %v413_v43, 0.0 }
 0x37e   :  { %v604_v45 = vpack.c.bf16 %v428_v41, %v427_v40 }
 0x37f   :  { %v601_v46 = vpack.c.bf16 %v426_v21, %v425_v44 }
 0x381   :  { %602 = vmatpush3.bf16.msra.mxu1 %v601_v46 }
 0x382   :  { %603 = vmatprep.subr.bf16.mxu1 %v650_v36 }
 0x385   :  { %605 = vmatpush3.bf16.msra.mxu1 %v604_v45 }
 0x388   :  { %598 = vmatmul.mubr.msk.f32.vlgmr.msra.gmra.mrb[8].mxu1 %vm241_vm1, %v733_v59 }
 0x45b   :  { %v503_v48 = vpop.f32.mrb[8].mxu1 }
 0x45c   :  { %v504_v49 = vadd.f32 %v503_v48, %v433_v47  ;;  %v599_v42 = vpop.f32.mrb[9].mxu1 }
 0x45e   :  { %635 = vtanh.f32 %v504_v49 }
 0x468   :  { %v636_v50 = vpop.eup %635 }
 0x469   :  { %v508_v51 = vsub.f32 1.0, %v636_v50 }
 0x46b   :  { %v509_v52 = vsel %vm141_vm11, %v508_v51, %v636_v50 }
 0x46c   :  { %v510_v53 = vmul.f32 %v509_v52, %v509_v52 }
 0x46e   :  { %v512_v13 = vsel %vm511_vm2, %v510_v53, 0.0 }
 0x46f   :  { %v513_v16 = vrot.slane %v512_v13, 4 }
 0x471   :  { %v514_v54 = vadd.f32 %v513_v16, %v512_v13 }
 0x473   :  { %v515_v55 = vrot.slane %v514_v54, 2 }
 0x475   :  { %v516_v56 = vadd.f32 %v515_v55, %v514_v54 }
 0x477   :  { %v517_v57 = vrot.slane %v516_v56, 1 }
 0x479   :  { %v518_v58 = vadd.f32 %v517_v57, %v516_v56 }
 0x47b   :  { %v519_v59 = vadd.f32 1e-30, %v518_v58 }
 0x47d   :  { %637 = vrsqrt.f32 %v519_v59 }
 0x487   :  { %v638_v60 = vpop.eup %637 }
 0x488   :  { %v521_v61 = vmul.f32 %v638_v60, %v509_v52 }
 0x48a   :  { %522 = vst [vmem:[%s763_s2] sm:$0xf] %v521_v61 }

</bundles_post_ra>
